<compile_context>
chip_gen: v5e
topology: v5e:2x2
jax: 0.10.0
libtpu: 0.0.40
codegen_flags: <defaults>
</compile_context>

<pallas_src>
import functools

import jax
import jax.numpy as jnp
from jax.experimental import pallas as pl
from jax.experimental.pallas import tpu as pltpu


def _round_up(x, m):
    return (x + m - 1) // m * m


def _gated_residual_kernel(x_ref, xres_ref, w1_ref, w2_ref, b_ref, o_ref):
    x = x_ref[...]            # (tile_m, Fp) f32
    xr = xres_ref[...]        # (tile_m, Fp) f32
    # MXU matmuls in the weights' dtype (bf16 by default), f32 accumulation.
    z = (
        jnp.dot(x.astype(w1_ref.dtype), w1_ref[...],
                preferred_element_type=jnp.float32)
        + jnp.dot(xr.astype(w2_ref.dtype), w2_ref[...],
                  preferred_element_type=jnp.float32)
        + b_ref[...]
    )
    gate = jax.nn.sigmoid(z)                       # f32 elementwise (VPU/EUP)
    o_ref[...] = (x + gate * xr).astype(o_ref.dtype)


def prepare_gated_residual_params(weight, bias, *, matmul_dtype=jnp.bfloat16):
    """One-time prep of the PyTorch-layout (F, 2F) weight and (F,) bias.

    Splits the concat-Linear weight into its X / X_res halves, transposes,
    zero-pads the feature axis to a multiple of 128 (lane-dense) and casts the
    weight halves to `matmul_dtype`.  Call this once, outside the hot path.
    """
    F = weight.shape[0]
    assert weight.shape == (F, 2 * F), "expected PyTorch Linear(2F -> F) weight"
    Fp = _round_up(F, 128)
    w1_t = weight[:, :F].T    # (F, F): acts on X
    w2_t = weight[:, F:].T    # (F, F): acts on X_res
    if Fp != F:
        pad2 = ((0, Fp - F), (0, Fp - F))
        w1_t = jnp.pad(w1_t, pad2)
        w2_t = jnp.pad(w2_t, pad2)
        bias = jnp.pad(bias, (0, Fp - F))
    return (w1_t.astype(matmul_dtype),
            w2_t.astype(matmul_dtype),
            bias.reshape(1, Fp).astype(jnp.float32))


@functools.partial(jax.jit, static_argnames=("tile_m",))
def gated_residual(x, x_res, w1_t, w2_t, bias, *, tile_m=512):
    """x, x_res: (B, S, F).  w1_t/w2_t: (Fp, Fp), bias: (1, Fp) from
    prepare_gated_residual_params.  Returns (B, S, F) in x.dtype."""
    B, S, F = x.shape
    Fp = w1_t.shape[0]
    M = B * S

    # Row tiling: big tiles (multiple of 8), clamped to the (padded) row count.
    tile_m = _round_up(max(tile_m, 8), 8)
    tile_m = min(tile_m, _round_up(M, 8))

    # Keep comfortably inside the smallest (v7x, 64 MiB) VMEM budget.
    w_itemsize = jnp.dtype(w1_t.dtype).itemsize

    def vmem_est(tm):
        w_bytes = 2 * Fp * Fp * w_itemsize       # weight halves, single-buffered
        act_bytes = 3 * 2 * tm * Fp * 4          # x, x_res, out (double-buffered)
        return w_bytes + act_bytes + Fp * 4      # + bias

    while tile_m > 64 and vmem_est(tile_m) > 48 * 1024 * 1024:
        tile_m = _round_up(tile_m // 2, 8)
    # TODO(synk): add an output-feature (N) grid axis when the two Fp x Fp
    # weight slabs no longer fit the VMEM budget (F >~ 2k f32 / 3k bf16).

    Mp = _round_up(M, tile_m)
    vmem_limit = min(max(int(vmem_est(tile_m) * 2), 32 * 1024 * 1024),
                     64 * 1024 * 1024)

    x2 = x.reshape(M, F)
    xr2 = x_res.reshape(M, F)
    if (Mp, Fp) != (M, F):
        x2 = jnp.pad(x2, ((0, Mp - M), (0, Fp - F)))
        xr2 = jnp.pad(xr2, ((0, Mp - M), (0, Fp - F)))

    out = pl.pallas_call(
        _gated_residual_kernel,
        out_shape=jax.ShapeDtypeStruct((Mp, Fp), x.dtype),
        grid_spec=pltpu.PrefetchScalarGridSpec(
            num_scalar_prefetch=0,
            grid=(Mp // tile_m,),
            in_specs=[
                pl.BlockSpec((tile_m, Fp), lambda i: (i, 0)),   # X rows
                pl.BlockSpec((tile_m, Fp), lambda i: (i, 0)),   # X_res rows
                pl.BlockSpec((Fp, Fp), lambda i: (0, 0),
                             pipeline_mode=pl.Buffered(1)),     # W1^T resident
                pl.BlockSpec((Fp, Fp), lambda i: (0, 0),
                             pipeline_mode=pl.Buffered(1)),     # W2^T resident
                pl.BlockSpec((1, Fp), lambda i: (0, 0),
                             pipeline_mode=pl.Buffered(1)),     # bias resident
            ],
            out_specs=pl.BlockSpec((tile_m, Fp), lambda i: (i, 0)),
        ),
        compiler_params=pltpu.CompilerParams(
            dimension_semantics=("parallel",),
            vmem_limit_bytes=vmem_limit,
        ),
    )(x2, xr2, w1_t, w2_t, bias)

    return out[:M, :F].reshape(B, S, F)


def _reference(x, x_res, weight, bias):
    cat = jnp.concatenate([x, x_res], axis=2)
    gate = jax.nn.sigmoid(jnp.einsum("bsf,of->bso", cat, weight) + bias)
    return x + gate * x_res


if __name__ == "__main__":
    B, S, F = 2, 8, 32
    bias_init = 0.1

    key = jax.random.PRNGKey(0)
    kx, kxr, kw = jax.random.split(key, 3)

    x = jax.random.normal(kx, (B, S, F), dtype=jnp.float32)
    x_res = jax.random.normal(kxr, (B, S, F), dtype=jnp.float32)

    # Xavier-uniform init for the (F, 2F) linear weight, constant bias.
    fan_in, fan_out = 2 * F, F
    bound = (6.0 / (fan_in + fan_out)) ** 0.5
    weight = jax.random.uniform(
        kw, (F, 2 * F), minval=-bound, maxval=bound, dtype=jnp.float32
    )
    bias = jnp.full((F,), bias_init, dtype=jnp.float32)

    ref = _reference(x, x_res, weight, bias)

    # Default (bf16 MXU) path.
    w1_t, w2_t, b2 = prepare_gated_residual_params(weight, bias)
    out = gated_residual(x, x_res, w1_t, w2_t, b2)
    out = jax.block_until_ready(out)
    assert out.shape == (B, S, F)
    assert jnp.allclose(out, ref, atol=5e-2, rtol=5e-2), "bf16 path mismatch"

    # Full-precision path (exact check of the kernel semantics).
    w1_f, w2_f, b_f = prepare_gated_residual_params(
        weight, bias, matmul_dtype=jnp.float32
    )
    out_f = jax.block_until_ready(gated_residual(x, x_res, w1_f, w2_f, b_f))
    assert jnp.allclose(out_f, ref, atol=1e-5, rtol=1e-5), "f32 path mismatch"

    print("KERNEL_OK")
</pallas_src>

<mosaic_0001>
module attributes {stable_mosaic.version = 11 : i64} {
  func.func @_gated_residual_kernel(%arg0: i32, %arg1: memref<16x128xf32, #tpu.memory_space<vmem>>, %arg2: memref<16x128xf32, #tpu.memory_space<vmem>>, %arg3: memref<128x128xbf16, #tpu.memory_space<vmem>>, %arg4: memref<128x128xbf16, #tpu.memory_space<vmem>>, %arg5: memref<1x128xf32, #tpu.memory_space<vmem>>, %arg6: memref<16x128xf32, #tpu.memory_space<vmem>>) attributes {dimension_semantics = [#tpu.dimension_semantics<parallel>], iteration_bounds = array<i64: 1>, scalar_prefetch = 0 : i64, scratch_operands = 0 : i64, tpu.core_type = #tpu.core_type<tc>, window_params = [{transform_indices = @transform_0, window_bounds = array<i64: 16, 128>}, {transform_indices = @transform_1, window_bounds = array<i64: 16, 128>}, {pipeline_mode = #tpu.pipeline_mode<synchronous>, transform_indices = @transform_2, window_bounds = array<i64: 128, 128>}, {pipeline_mode = #tpu.pipeline_mode<synchronous>, transform_indices = @transform_3, window_bounds = array<i64: 128, 128>}, {pipeline_mode = #tpu.pipeline_mode<synchronous>, transform_indices = @transform_4, window_bounds = array<i64: 1, 128>}, {transform_indices = @transform_5, window_bounds = array<i64: 16, 128>}]} {
    %c0 = arith.constant 0 : index
    %c0_0 = arith.constant 0 : index
    %0 = vector.load %arg1[%c0, %c0_0] : memref<16x128xf32, #tpu.memory_space<vmem>>, vector<16x128xf32>
    %c0_1 = arith.constant 0 : index
    %c0_2 = arith.constant 0 : index
    %1 = vector.load %arg2[%c0_1, %c0_2] : memref<16x128xf32, #tpu.memory_space<vmem>>, vector<16x128xf32>
    %2 = arith.truncf %0 : vector<16x128xf32> to vector<16x128xbf16>
    %c0_3 = arith.constant 0 : index
    %c0_4 = arith.constant 0 : index
    %3 = vector.load %arg3[%c0_3, %c0_4] : memref<128x128xbf16, #tpu.memory_space<vmem>>, vector<128x128xbf16>
    %cst = arith.constant dense<0.000000e+00> : vector<16x128xf32>
    %4 = tpu.matmul %2, %3, %cst {dimension_numbers = #tpu.dot_dimension_numbers<[1], [0], [0], [1], [0, 0, 1, 1], [], []>} : vector<16x128xbf16>, vector<128x128xbf16>, vector<16x128xf32> -> vector<16x128xf32>
    %5 = arith.truncf %1 : vector<16x128xf32> to vector<16x128xbf16>
    %c0_5 = arith.constant 0 : index
    %c0_6 = arith.constant 0 : index
    %6 = vector.load %arg4[%c0_5, %c0_6] : memref<128x128xbf16, #tpu.memory_space<vmem>>, vector<128x128xbf16>
    %cst_7 = arith.constant dense<0.000000e+00> : vector<16x128xf32>
    %7 = tpu.matmul %5, %6, %cst_7 {dimension_numbers = #tpu.dot_dimension_numbers<[1], [0], [0], [1], [0, 0, 1, 1], [], []>} : vector<16x128xbf16>, vector<128x128xbf16>, vector<16x128xf32> -> vector<16x128xf32>
    %8 = arith.addf %4, %7 : vector<16x128xf32>
    %c0_8 = arith.constant 0 : index
    %c0_9 = arith.constant 0 : index
    %9 = vector.load %arg5[%c0_8, %c0_9] : memref<1x128xf32, #tpu.memory_space<vmem>>, vector<1x128xf32>
    %10 = vector.broadcast %9 : vector<1x128xf32> to vector<16x128xf32>
    %11 = arith.addf %8, %10 : vector<16x128xf32>
    %12 = arith.negf %11 : vector<16x128xf32>
    %13 = math.exp %12 : vector<16x128xf32>
    %cst_10 = arith.constant 1.000000e+00 : f32
    %14 = vector.broadcast %cst_10 : f32 to vector<16x128xf32>
    %15 = arith.addf %14, %13 : vector<16x128xf32>
    %16 = arith.divf %14, %15 : vector<16x128xf32>
    %17 = arith.mulf %16, %1 : vector<16x128xf32>
    %18 = arith.addf %0, %17 : vector<16x128xf32>
    %c0_11 = arith.constant 0 : index
    %c0_12 = arith.constant 0 : index
    %19 = vector.load %arg6[%c0_11, %c0_12] : memref<16x128xf32, #tpu.memory_space<vmem>>, vector<16x128xf32>
    tpu.vector_store %arg6[%c0_11, %c0_12], %18 {strides = array<i32>} : memref<16x128xf32, #tpu.memory_space<vmem>>, vector<16x128xf32>,
    return
  }
  func.func @transform_0(%arg0: i32) -> (i32, i32) {
    %c0_i32 = arith.constant 0 : i32
    %c0_i32_0 = arith.constant 0 : i32
    return %arg0, %c0_i32 : i32, i32
  }
  func.func @transform_1(%arg0: i32) -> (i32, i32) {
    %c0_i32 = arith.constant 0 : i32
    %c0_i32_0 = arith.constant 0 : i32
    return %arg0, %c0_i32 : i32, i32
  }
  func.func @transform_2(%arg0: i32) -> (i32, i32) {
    %c0_i32 = arith.constant 0 : i32
    %c0_i32_0 = arith.constant 0 : i32
    %c0_i32_1 = arith.constant 0 : i32
    return %c0_i32, %c0_i32_0 : i32, i32
  }
  func.func @transform_3(%arg0: i32) -> (i32, i32) {
    %c0_i32 = arith.constant 0 : i32
    %c0_i32_0 = arith.constant 0 : i32
    %c0_i32_1 = arith.constant 0 : i32
    return %c0_i32, %c0_i32_0 : i32, i32
  }
  func.func @transform_4(%arg0: i32) -> (i32, i32) {
    %c0_i32 = arith.constant 0 : i32
    %c0_i32_0 = arith.constant 0 : i32
    %c0_i32_1 = arith.constant 0 : i32
    return %c0_i32, %c0_i32_0 : i32, i32
  }
  func.func @transform_5(%arg0: i32) -> (i32, i32) {
    %c0_i32 = arith.constant 0 : i32
    %c0_i32_0 = arith.constant 0 : i32
    return %arg0, %c0_i32 : i32, i32
  }
}

</mosaic_0001>

<bundles_post_ra>
// kernel: gated_residual.1
= control target key start
LH: loop header
LB: loop body
LE: loop exit
PB: predicated region body
PF: predicated region fallthrough
CT: control target
= control target key end

     0   :  { %10 = vsyncpa [#allocation3], 0  ;;  %s478_s0 = inlined_call_operand.vmem [shape: f32[16,128], index: 0, kind: input, shape index: {}]   ;;  %s479_s1 = inlined_call_operand.vmem [shape: f32[16,128], index: 1, kind: input, shape index: {}]   ;;  %s480_s2 = inlined_call_operand.hbm [shape: bf16[128,128], index: 2, kind: input, shape index: {}]   ;;  %s481_s3 = inlined_call_operand.hbm [shape: bf16[128,128], index: 3, kind: input, shape index: {}]   ;;  %s482_s4 = inlined_call_operand.vmem [shape: f32[1,128], index: 4, kind: input, shape index: {}]   ;;  %s483_s5 = inlined_call_operand.vmem [shape: f32[16,128], index: 5, kind: output, shape index: {}]  }
   0x1   :  { %s20_s20 = sshll.u32 %s480_s2, 4  ;;  %s21_s20 = int_to_ptr.hbm [resolvable:$true] %s20_s20 }
   0x2   :  { %11 = vsyncpa [#allocation5], 0  ;;  %s417_s21 = smov [#allocation2]   ;;  %s33_s25 = sshll.u32 %s481_s3, 4  ;;  %s34_s25 = int_to_ptr.hbm [resolvable:$true] %s33_s25 }
   0x3   :  { %s22_s22 = sshll.u32 %s417_s21, 4  ;;  %s418_s26 = smov 64   ;;  %s23_s22 = int_to_ptr.vmem [resolvable:$true] %s22_s22 }
   0x4   :  { %s419_s27 = smov 4   ;;  %s420_s28 = smov [#allocation4]  }
   0x5   :  { %28 = dma.hbm_to_vmem [thread:$0]  %s21_s20, 1024, %s23_s22, [#allocation3], %s418_s26, %s418_s26, %s419_s27  }
   0x6   :  { %s35_s29 = sshll.u32 %s420_s28, 4  ;;  %s36_s29 = int_to_ptr.vmem [resolvable:$true] %s35_s29 }
   0x7   :  { %41 = dma.hbm_to_vmem [thread:$0]  %s34_s25, 1024, %s36_s29, [#allocation5], %s418_s26, %s418_s26, %s419_s27  }
   0x8   :  { %413 = dma.done.wait [#allocation3], 1024  }
   0x9   :  { %414 = vsyncadd [#allocation3], 4294966272 }
   0xa   :  { %415 = dma.done.wait [#allocation5], 1024  }
   0xb   :  { %416 = vsyncadd [#allocation5], 4294966272  ;;  %v351_v0 = vld [vmem:[#allocation4 + $0x38] sm:$0xff]  ;;  %v350_v2 = vld [vmem:[#allocation4 + $0x30] sm:$0xff] }
   0xc   :  { %v343_v1 = vld [vmem:[#allocation2 + $0x38] sm:$0xff]  ;;  %138 = vmatpush.bf16.msra.mxu0 %v351_v0  ;;  %v342_v3 = vld [vmem:[#allocation2 + $0x30] sm:$0xff]  ;;  %v349_v4 = vld [vmem:[#allocation4 + $0x28] sm:$0xff] }
   0xd   :  { %200 = vmatpush.bf16.msra.mxu1 %v343_v1  ;;  %v341_v5 = vld [vmem:[#allocation2 + $0x28] sm:$0xff]  ;;  %v348_v6 = vld [vmem:[#allocation4 + $0x20] sm:$0xff]  ;;  %v347_v8 = vld [vmem:[#allocation4 + $0x18] sm:$0xff] }
   0xe   :  { %v340_v7 = vld [vmem:[#allocation2 + $0x20] sm:$0xff]  ;;  %v339_v9 = vld [vmem:[#allocation2 + $0x18] sm:$0xff]  ;;  %v346_v10 = vld [vmem:[#allocation4 + $0x10] sm:$0xff] }
   0xf   :  { %v338_v11 = vld [vmem:[#allocation2 + $0x10] sm:$0xff]  ;;  %v345_v12 = vld [vmem:[#allocation4 + $0x8] sm:$0xff]  ;;  %v344_v14 = vld [vmem:[#allocation4] sm:$0xff] }
  0x10   :  { %139 = vmatpush.bf16.msra.mxu0 %v350_v2  ;;  %v337_v13 = vld [vmem:[#allocation2 + $0x8] sm:$0xff]  ;;  %v336_v15 = vld [vmem:[#allocation2] sm:$0xff] }
  0x11   :  { %201 = vmatpush.bf16.msra.mxu1 %v342_v3  ;;  %v54_v16 = vld [vmem:[%s479_s1] sm:$0xff]  ;;  %v55_v17 = vld [vmem:[%s479_s1 + $0x8] sm:$0xff] }
  0x12   :  { %v52_v18 = vld [vmem:[%s478_s0] sm:$0xff]  ;;  %v53_v19 = vld [vmem:[%s478_s0 + $0x8] sm:$0xff]  ;;  %v73_v20 = vpack.c.bf16 %v55_v17, %v54_v16 }
  0x13   :  { %v56_v21 = vpack.c.bf16 %v53_v19, %v52_v18  ;;  %v356_v22 = vld [vmem:[%s482_s4] ss:$0 sm:$0xff] }
  0x14   :  { %140 = vmatpush.bf16.msra.mxu0 %v349_v4 }
  0x15   :  { %202 = vmatpush.bf16.msra.mxu1 %v341_v5 }
  0x18   :  { %141 = vmatpush.bf16.msra.mxu0 %v348_v6 }
  0x19   :  { %203 = vmatpush.bf16.msra.mxu1 %v340_v7 }
  0x1c   :  { %142 = vmatpush.bf16.msra.mxu0 %v347_v8 }
  0x1d   :  { %204 = vmatpush.bf16.msra.mxu1 %v339_v9 }
  0x20   :  { %143 = vmatpush.bf16.msra.mxu0 %v346_v10 }
  0x21   :  { %205 = vmatpush.bf16.msra.mxu1 %v338_v11 }
  0x24   :  { %144 = vmatpush.bf16.msra.mxu0 %v345_v12 }
  0x25   :  { %206 = vmatpush.bf16.msra.mxu1 %v337_v13 }
  0x28   :  { %145 = vmatpush.bf16.msra.mxu0 %v344_v14 }
  0x29   :  { %207 = vmatpush.bf16.msra.mxu1 %v336_v15 }
  0x2b   :  { %146 = vmatmul.bf16.vlgmr.msra.gmra.mxu0 %v73_v20 }
  0x2c   :  { %208 = vmatmul.bf16.vlgmr.msra.gmra.mxu1 %v56_v21 }
  0xa8   :  { %v147_v23 = vpop.f32.mrf.mxu0 }
  0xa9   :  { %v209_v24 = vpop.f32.mrf.mxu1 }
  0xaa   :  { %v210_v25 = vadd.f32 %v209_v24, %v147_v23 }
  0xac   :  { %v218_v26 = vadd.f32 %v356_v22, %v210_v25 }
  0xae   :  { %v334_v27 = vmul.f32 -1.442695, %v218_v26 }
  0xb0   :  { %357 = vpow2.f32 %v334_v27  ;;  %v149_v28 = vpop.f32.mrf.mxu0 }
  0xb1   :  { %v211_v29 = vpop.f32.mrf.mxu1 }
  0xb2   :  { %v212_v30 = vadd.f32 %v211_v29, %v149_v28 }
  0xb4   :  { %v219_v31 = vadd.f32 %v356_v22, %v212_v30 }
  0xb6   :  { %v358_v32 = vpop.eup %357  ;;  %v335_v33 = vmul.f32 -1.442695, %v219_v31 }
  0xb7   :  { %v226_v34 = vadd.f32 1.0, %v358_v32 }
  0xb8   :  { %359 = vpow2.f32 %v335_v33 }
  0xb9   :  { %361 = vrcp.f32 %v226_v34  ;;  %v239_v40 = vand.u32 2147483648, %v226_v34  ;;  %v237_v42 = vand.u32 2147483647, %v226_v34  ;;  %vm233_vm1 = vweird.f32 %v226_v34 }
  0xbb   :  { %v240_v45 = vor.u32 1.1754944e-38, %v239_v40  ;;  %vm238_vm3 = vcmp.eq.f32.partialorder %v237_v42, 8.507059e+37 }
  0xbe   :  { %v360_v35 = vpop.eup %359 }
  0xbf   :  { %v362_v36 = vpop.eup %361  ;;  %v227_v37 = vadd.f32 1.0, %v360_v35 }
  0xc0   :  { %v229_v38 = vmul.f32 %v362_v36, %v226_v34  ;;  %vm234_vm0 = vweird.f32 %v362_v36 }
  0xc1   :  { %363 = vrcp.f32 %v227_v37  ;;  %vm235_vm2 = vmor %vm233_vm1, %vm234_vm0  ;;  %v254_v51 = vand.u32 2147483648, %v227_v37  ;;  %v252_v54 = vand.u32 2147483647, %v227_v37  ;;  %vm248_vm5 = vweird.f32 %v227_v37 }
  0xc2   :  { %v230_v39 = vsub.f32 1.0, %v229_v38 }
  0xc3   :  { %v255_v56 = vor.u32 1.1754944e-38, %v254_v51  ;;  %vm253_vm7 = vcmp.eq.f32.partialorder %v252_v54, 8.507059e+37 }
  0xc4   :  { %v231_v41 = vmul.f32 %v362_v36, %v230_v39 }
  0xc6   :  { %v232_v43 = vadd.f32 %v362_v36, %v231_v41 }
  0xc7   :  { %v364_v44 = vpop.eup %363 }
  0xc8   :  { %v236_v46 = vsel %vm235_vm2, %v362_v36, %v232_v43  ;;  %v244_v47 = vmul.f32 %v364_v44, %v227_v37  ;;  %vm249_vm4 = vweird.f32 %v364_v44 }
  0xc9   :  { %v241_v48 = vsel %vm238_vm3, %v240_v45, %v236_v46  ;;  %vm250_vm6 = vmor %vm248_vm5, %vm249_vm4 }
  0xca   :  { %v258_v49 = vmul.f32 %v241_v48, %v54_v16  ;;  %v245_v50 = vsub.f32 1.0, %v244_v47 }
  0xcc   :  { %v260_v52 = vadd.f32 %v258_v49, %v52_v18  ;;  %v246_v53 = vmul.f32 %v364_v44, %v245_v50 }
  0xce   :  { %262 = vst [vmem:[%s483_s5] sm:$0xff] %v260_v52  ;;  %v247_v55 = vadd.f32 %v364_v44, %v246_v53 }
  0xd0   :  { %v251_v57 = vsel %vm250_vm6, %v364_v44, %v247_v55 }
  0xd1   :  { %v256_v58 = vsel %vm253_vm7, %v255_v56, %v251_v57 }
  0xd2   :  { %v259_v59 = vmul.f32 %v256_v58, %v55_v17 }
  0xd4   :  { %v261_v60 = vadd.f32 %v259_v59, %v53_v19 }
  0xd6   :  { %263 = vst [vmem:[%s483_s5 + $0x8] sm:$0xff] %v261_v60 }
  0xd7   :  { %268 = vsyncpa [#allocation3], 1 }
  0xd8   :  { %269 = vsyncpa [#allocation5], 1 }

</bundles_post_ra>
